<compile_context>
chip_gen: v5e
topology: v5e:2x2
jax: 0.10.0
libtpu: 0.0.40
codegen_flags: <defaults>
</compile_context>

<pallas_src>
import jax
import jax.numpy as jnp
from jax.experimental import pallas as pl
from jax.experimental.pallas import tpu as pltpu


def _linear_sub_kernel(x_ref, p_ref, o_ref):
    # x_ref: (tile_b, Fin)            activations
    # p_ref: (Fin + 1, Fout_pad)      rows 0..Fin-1 = W.T, row Fin = bias - other
    # o_ref: (tile_b, Fout_pad)
    x = x_ref[...]
    p = p_ref[...]
    fin = x.shape[1]
    o_ref[...] = (
        jnp.dot(x, p[:fin, :], preferred_element_type=jnp.float32)
        + p[fin : fin + 1, :]
    )


def make_linear_sub(weight, bias, other, *, max_tile_b=512):
    """Build `y = x @ weight.T + bias - other` as one jitted pallas_call.

    The (Fin+1, Fout_pad) parameter slab is precomputed once here (not per
    call).  Fout is padded to a multiple of 128 for lane-dense stores; batch
    is tiled at up to `max_tile_b` rows with a "parallel" grid axis.
    """
    Fout, Fin = weight.shape
    lane = 128
    fout_pad = ((Fout + lane - 1) // lane) * lane

    slab = jnp.concatenate([weight.T, (bias - other)[None, :]], axis=0)  # (Fin+1, Fout)
    slab = jnp.pad(slab, ((0, 0), (0, fout_pad - Fout)))                 # (Fin+1, Fout_pad)
    slab = jax.device_put(slab.astype(jnp.float32))

    @jax.jit
    def linear_sub(x):
        x = x.astype(jnp.float32)
        B = x.shape[0]

        # Full-batch tile when small; 512-row (f32) tiles when B grows.
        tile_b = B if B <= max_tile_b else max_tile_b
        b_pad = ((B + tile_b - 1) // tile_b) * tile_b
        x_p = jnp.pad(x, ((0, b_pad - B), (0, 0))) if b_pad != B else x

        out = pl.pallas_call(
            _linear_sub_kernel,
            out_shape=jax.ShapeDtypeStruct((b_pad, fout_pad), jnp.float32),
            grid_spec=pltpu.PrefetchScalarGridSpec(
                num_scalar_prefetch=0,
                grid=(b_pad // tile_b,),
                in_specs=[
                    pl.BlockSpec((tile_b, Fin), lambda i: (i, 0)),
                    pl.BlockSpec((Fin + 1, fout_pad), lambda i: (0, 0)),
                ],
                out_specs=pl.BlockSpec((tile_b, fout_pad), lambda i: (i, 0)),
            ),
            compiler_params=pltpu.CompilerParams(
                # Shards batch tiles across both v7x TensorCores at scale;
                # a no-op for grid=(1,).
                dimension_semantics=("parallel",),
            ),
        )(x_p, slab)

        return out[:B, :Fout]

    return linear_sub


if __name__ == "__main__":
    key = jax.random.PRNGKey(0)
    k_x, k_w, k_b, k_o = jax.random.split(key, 4)

    B, Fin, Fout = 8, 3, 8

    # Deterministic parameter init mimicking torch.nn.Linear(3, 8):
    # uniform(-1/sqrt(fan_in), 1/sqrt(fan_in)).
    bound = 1.0 / jnp.sqrt(jnp.float32(Fin))
    weight = jax.random.uniform(k_w, (Fout, Fin), jnp.float32, -bound, bound)
    bias = jax.random.uniform(k_b, (Fout,), jnp.float32, -bound, bound)

    # TODO(synk): `other` is an undefined free global in the original PyTorch
    # module; materialized here as a deterministic (8,) tensor.
    other = jax.random.normal(k_o, (Fout,), jnp.float32)

    x = jax.random.normal(k_x, (B, Fin), jnp.float32)

    linear_sub = make_linear_sub(weight, bias, other)
    out = linear_sub(x)
    jax.block_until_ready(out)

    # Reference check in plain JAX.
    ref = x @ weight.T + bias - other
    assert out.shape == (B, Fout), f"bad output shape {out.shape}"
    assert jnp.allclose(out, ref, atol=1e-5, rtol=1e-5), "mismatch vs reference"

    print("KERNEL_OK")
</pallas_src>

<mosaic_0001>
module attributes {stable_mosaic.version = 11 : i64} {
  func.func @_linear_sub_kernel(%arg0: i32, %arg1: memref<8x3xf32, #tpu.memory_space<vmem>>, %arg2: memref<4x128xf32, #tpu.memory_space<vmem>>, %arg3: memref<8x128xf32, #tpu.memory_space<vmem>>) attributes {dimension_semantics = [#tpu.dimension_semantics<parallel>], iteration_bounds = array<i64: 1>, scalar_prefetch = 0 : i64, scratch_operands = 0 : i64, tpu.core_type = #tpu.core_type<tc>, window_params = [{transform_indices = @transform_0, window_bounds = array<i64: 8, 3>}, {pipeline_mode = #tpu.pipeline_mode<synchronous>, transform_indices = @transform_1, window_bounds = array<i64: 4, 128>}, {transform_indices = @transform_2, window_bounds = array<i64: 8, 128>}]} {
    %c0 = arith.constant 0 : index
    %c0_0 = arith.constant 0 : index
    %0 = vector.load %arg1[%c0, %c0_0] : memref<8x3xf32, #tpu.memory_space<vmem>>, vector<8x3xf32>
    %c0_1 = arith.constant 0 : index
    %c0_2 = arith.constant 0 : index
    %1 = vector.load %arg2[%c0_1, %c0_2] : memref<4x128xf32, #tpu.memory_space<vmem>>, vector<4x128xf32>
    %2 = vector.extract_strided_slice %1 {offsets = [0, 0], sizes = [3, 128], strides = [1, 1]} : vector<4x128xf32> to vector<3x128xf32>
    %cst = arith.constant dense<0.000000e+00> : vector<8x128xf32>
    %3 = tpu.matmul %0, %2, %cst {dimension_numbers = #tpu.dot_dimension_numbers<[1], [0], [0], [1], [0, 0, 1, 1], [], []>} : vector<8x3xf32>, vector<3x128xf32>, vector<8x128xf32> -> vector<8x128xf32>
    %4 = vector.extract_strided_slice %1 {offsets = [3, 0], sizes = [1, 128], strides = [1, 1]} : vector<4x128xf32> to vector<1x128xf32>
    %5 = vector.broadcast %4 : vector<1x128xf32> to vector<8x128xf32>
    %6 = arith.addf %3, %5 : vector<8x128xf32>
    %c0_3 = arith.constant 0 : index
    %c0_4 = arith.constant 0 : index
    %7 = vector.load %arg3[%c0_3, %c0_4] : memref<8x128xf32, #tpu.memory_space<vmem>>, vector<8x128xf32>
    tpu.vector_store %arg3[%c0_3, %c0_4], %6 {strides = array<i32>} : memref<8x128xf32, #tpu.memory_space<vmem>>, vector<8x128xf32>,
    return
  }
  func.func @transform_0(%arg0: i32) -> (i32, i32) {
    %c0_i32 = arith.constant 0 : i32
    %c0_i32_0 = arith.constant 0 : i32
    return %arg0, %c0_i32 : i32, i32
  }
  func.func @transform_1(%arg0: i32) -> (i32, i32) {
    %c0_i32 = arith.constant 0 : i32
    %c0_i32_0 = arith.constant 0 : i32
    %c0_i32_1 = arith.constant 0 : i32
    return %c0_i32, %c0_i32_0 : i32, i32
  }
  func.func @transform_2(%arg0: i32) -> (i32, i32) {
    %c0_i32 = arith.constant 0 : i32
    %c0_i32_0 = arith.constant 0 : i32
    return %arg0, %c0_i32 : i32, i32
  }
}

</mosaic_0001>

<bundles_post_ra>
// kernel: linear_sub.1
= control target key start
LH: loop header
LB: loop body
LE: loop exit
PB: predicated region body
PF: predicated region fallthrough
CT: control target
= control target key end

     0   :  { %vm19_vm0 = vcmask 1042432   ;;  %vm15_vm1 = vcmask 23552   ;;  %s114_s0 = inlined_call_operand.vmem [shape: f32[8,3], index: 0, kind: input, shape index: {}]   ;;  %s115_s1 = inlined_call_operand.vmem [shape: f32[4,128], index: 1, kind: input, shape index: {}]   ;;  %s116_s2 = inlined_call_operand.hbm [shape: f32[8,128], index: 2, kind: output, shape index: {}]  }
   0x1   :  { %v13_v0 = vld [vmem:[%s115_s1] sm:$0xf] }
   0x2   :  { %v12_v1 = vld [vmem:[%s114_s0] sm:$0xff]  ;;  %60 = vmatpush.msk.msra.mxu0 %vm19_vm0, %v13_v0 }
   0x3   :  { %7 = vsyncpa [#allocation3], 0  ;;  %61 = vmatmul.msk.f32.vlgmr.msra.gmra.mxu0 %vm15_vm1, %v12_v1  ;;  %v14_v2 = vperm.slane %v13_v0, 3  ;;  %s89_s13 = smov [#allocation2]   ;;  %s51_s17 = sshll.u32 %s116_s2, 4  ;;  %s52_s17 = int_to_ptr.hbm [resolvable:$true] %s51_s17 }
   0x4   :  { %s49_s14 = sshll.u32 %s89_s13, 4  ;;  %s50_s14 = int_to_ptr.vmem [resolvable:$true] %s49_s14 }
  0x80   :  { %v40_v3 = vpop.f32.mrf.mxu0 }
  0x81   :  { %v41_v4 = vadd.f32 %v40_v3, %v14_v2 }
  0x83   :  { %43 = vst [vmem:[#allocation2] sm:$0xff] %v41_v4 }
  0x84   :  { %54 = dma.vmem_to_hbm [thread:$0]  %s50_s14, 128, %s52_s17, [#allocation3]  }
  0x85   :  { %87 = dma.done.wait [#allocation3], 128  }
  0x86   :  { %88 = vsyncadd [#allocation3], 4294967168 }
  0x87   :  { %59 = vsyncpa [#allocation3], 1 }

</bundles_post_ra>
